<compile_context>
chip_gen: v7x
topology: tpu7x:2x2x1
jax: 0.10.0
libtpu: 0.0.40
codegen_flags: <defaults>
</compile_context>

<pallas_src>
import functools

import jax
import jax.numpy as jnp
from jax.experimental import pallas as pl
from jax.experimental.pallas import tpu as pltpu


def _round_up(v, m):
    return ((v + m - 1) // m) * m


def qlen_kernel(x_ref, w_in_ref, w_lin_ref, w_out_ref, o_ref, *, n_chunks):
    rows = x_ref.shape[0]
    cr = rows // n_chunks
    maxlen = o_ref.shape[1]

    # Hoisted single VMEM loads; reused for every sub-chunk / layer.
    w_in = w_in_ref[...]
    w_lin = w_lin_ref[...]
    w_out = w_out_ref[...]
    cdt = w_lin.dtype

    # Layer 0 (linin) per sub-chunk. Chunks are independent chains, so the
    # scheduler can overlap chunk i's tanh (EUP) with chunk i+1's dot (MXU).
    hs = []
    for c in range(n_chunks):
        xc = x_ref[pl.ds(c * cr, cr), :]
        hs.append(jnp.tanh(jnp.dot(xc, w_in, preferred_element_type=jnp.float32)))

    # Three applications of the *same* hidden linear layer (shared weight).
    for _ in range(3):
        hs = [
            jnp.tanh(jnp.dot(h.astype(cdt), w_lin,
                             preferred_element_type=jnp.float32))
            for h in hs
        ]

    # Output layer; store only the real maxlen lanes (narrow HBM writeback).
    for c in range(n_chunks):
        y = jnp.dot(hs[c].astype(cdt), w_out, preferred_element_type=jnp.float32)
        o_ref[pl.ds(c * cr, cr), :] = y[:, :maxlen].astype(o_ref.dtype)


def prepare_qlen_params(w_in, w_lin, w_out, compute_dtype=jnp.bfloat16):
    """Pad/cast weights once, hoisted out of the per-call forward path.

    Padded hidden/output lanes carry zero weights, so tanh(0)=0 propagates
    exact zeros and the math is unchanged.
    """
    d_in, hidden = w_in.shape
    maxlen = w_out.shape[1]
    LANE = 128
    hid_p = _round_up(hidden, LANE)   # 96  -> 128 (lane-dense hidden)
    out_p = _round_up(maxlen, LANE)   # 16  -> 128 (lane-dense MXU result)
    cd = compute_dtype

    w_in_p = jnp.zeros((d_in, hid_p), cd).at[:, :hidden].set(w_in.astype(cd))
    w_lin_p = (jnp.zeros((hid_p, hid_p), cd)
               .at[:hidden, :hidden].set(w_lin.astype(cd)))
    w_out_p = (jnp.zeros((hid_p, out_p), cd)
               .at[:hidden, :maxlen].set(w_out.astype(cd)))
    return w_in_p, w_lin_p, w_out_p, maxlen


@functools.partial(jax.jit, static_argnames=("maxlen", "block_rows"))
def qlen_forward(x, w_in_p, w_lin_p, w_out_p, *, maxlen, block_rows=1024):
    """x: (batch, 2*hsz); w_*_p: pre-padded bf16 weights from prepare_qlen_params."""
    batch, d_in = x.shape
    hid_p = w_in_p.shape[1]
    out_p = w_out_p.shape[1]
    cd = w_in_p.dtype

    # bf16 packs 16 rows per vreg tile; keep row tiles multiples of 16 sublanes.
    SUB = 16 if jnp.dtype(cd).itemsize == 2 else 8

    batch_r = _round_up(batch, SUB)
    tm = min(_round_up(block_rows, SUB), batch_r)
    # v7x megacore: if the whole batch would collapse into a single grid step
    # but there is enough work, split it so both TensorCores get a share.
    if batch_r == tm and tm >= 256:
        tm = _round_up(tm // 2, SUB)
    batch_p = _round_up(batch, tm)
    grid = (batch_p // tm,)

    # Sub-chunking inside the kernel (MXU/EUP overlap). Chunk rows must stay
    # multiples of SUB.
    n_chunks = 1
    for cand in (4, 2):
        if tm >= cand * 128 and tm % (cand * SUB) == 0:
            n_chunks = cand
            break

    # Cheap cast; pad only the remainder rows (no full zeros+scatter copy).
    x_c = x.astype(cd)
    if batch_p != batch:
        x_c = jnp.pad(x_c, ((0, batch_p - batch), (0, 0)))

    itemsize = jnp.dtype(cd).itemsize
    flops = 2 * batch_p * (d_in * hid_p + 3 * hid_p * hid_p + hid_p * out_p)
    transcendentals = 4 * batch_p * hid_p  # tanh calls
    bytes_accessed = (
        batch_p * d_in * itemsize
        + (w_in_p.size + w_lin_p.size + w_out_p.size) * itemsize
        + batch_p * maxlen * 4
    )

    out = pl.pallas_call(
        functools.partial(qlen_kernel, n_chunks=n_chunks),
        out_shape=jax.ShapeDtypeStruct((batch_p, maxlen), jnp.float32),
        grid_spec=pltpu.PrefetchScalarGridSpec(
            num_scalar_prefetch=0,
            grid=grid,
            in_specs=[
                pl.BlockSpec((tm, d_in), lambda i: (i, 0)),
                pl.BlockSpec((d_in, hid_p), lambda i: (0, 0)),    # resident
                pl.BlockSpec((hid_p, hid_p), lambda i: (0, 0)),   # resident
                pl.BlockSpec((hid_p, out_p), lambda i: (0, 0)),   # resident
            ],
            out_specs=pl.BlockSpec((tm, maxlen), lambda i: (i, 0)),
        ),
        compiler_params=pltpu.CompilerParams(
            dimension_semantics=("parallel",),
        ),
        cost_estimate=pl.CostEstimate(
            flops=flops,
            transcendentals=transcendentals,
            bytes_accessed=bytes_accessed,
        ),
    )(x_c, w_in_p, w_lin_p, w_out_p)

    if batch_p != batch:
        out = out[:batch]
    return out


def qlen_reference(x, w_in, w_lin, w_out, compute_dtype=jnp.bfloat16):
    # Mirrors the kernel's precision: bf16 operands, f32 accumulation.
    cd = compute_dtype
    h = jnp.tanh(jnp.dot(x.astype(cd), w_in.astype(cd),
                         preferred_element_type=jnp.float32))
    for _ in range(3):
        h = jnp.tanh(jnp.dot(h.astype(cd), w_lin.astype(cd),
                             preferred_element_type=jnp.float32))
    return jnp.dot(h.astype(cd), w_out.astype(cd),
                   preferred_element_type=jnp.float32)


if __name__ == "__main__":
    # Small shapes consistent with the module: hsz=32, maxlen=16.
    hsz = 32
    maxlen = 16

    key = jax.random.PRNGKey(0)
    k_x, k_in, k_lin, k_out, k_x2 = jax.random.split(key, 5)

    # Deterministic init, stored as (in_features, out_features).
    w_in = jax.random.normal(k_in, (2 * hsz, 3 * hsz), dtype=jnp.float32) * (
        1.0 / jnp.sqrt(2.0 * hsz)
    )
    w_lin = jax.random.normal(k_lin, (3 * hsz, 3 * hsz), dtype=jnp.float32) * (
        1.0 / jnp.sqrt(3.0 * hsz)
    )
    w_out = jax.random.normal(k_out, (3 * hsz, maxlen), dtype=jnp.float32) * (
        1.0 / jnp.sqrt(3.0 * hsz)
    )

    # Pad/cast weights once (hoisted out of the per-call path).
    w_in_p, w_lin_p, w_out_p, ml = prepare_qlen_params(w_in, w_lin, w_out)

    # Test 1: tiny batch (single grid step, no sub-chunking).
    batch = 8
    x = jax.random.normal(k_x, (batch, 2 * hsz), dtype=jnp.float32)
    pred = qlen_forward(x, w_in_p, w_lin_p, w_out_p, maxlen=ml)
    jax.block_until_ready(pred)
    ref = qlen_reference(x, w_in, w_lin, w_out)
    assert pred.shape == (batch, maxlen)
    assert jnp.allclose(pred, ref, atol=1e-2, rtol=1e-2), (
        float(jnp.max(jnp.abs(pred - ref)))
    )

    # Test 2: batch not a multiple of the tile -> remainder padding,
    # multi-step grid (megacore sharding) and in-kernel sub-chunking.
    batch2 = 384
    x2 = jax.random.normal(k_x2, (batch2, 2 * hsz), dtype=jnp.float32)
    pred2 = qlen_forward(x2, w_in_p, w_lin_p, w_out_p, maxlen=ml,
                         block_rows=256)
    jax.block_until_ready(pred2)
    ref2 = qlen_reference(x2, w_in, w_lin, w_out)
    assert pred2.shape == (batch2, maxlen)
    assert jnp.allclose(pred2, ref2, atol=1e-2, rtol=1e-2), (
        float(jnp.max(jnp.abs(pred2 - ref2)))
    )

    print("KERNEL_OK")
</pallas_src>

<mosaic_0001>
module attributes {stable_mosaic.version = 11 : i64} {
  func.func @qlen_kernel(%arg0: i32, %arg1: memref<16x64xbf16, #tpu.memory_space<vmem>>, %arg2: memref<64x128xbf16, #tpu.memory_space<vmem>>, %arg3: memref<128x128xbf16, #tpu.memory_space<vmem>>, %arg4: memref<128x128xbf16, #tpu.memory_space<vmem>>, %arg5: memref<16x16xf32, #tpu.memory_space<vmem>>) attributes {dimension_semantics = [#tpu.dimension_semantics<parallel>], iteration_bounds = array<i64: 1>, scalar_prefetch = 0 : i64, scratch_operands = 0 : i64, tpu.core_type = #tpu.core_type<tc>, window_params = [{transform_indices = @transform_0, window_bounds = array<i64: 16, 64>}, {pipeline_mode = #tpu.pipeline_mode<synchronous>, transform_indices = @transform_1, window_bounds = array<i64: 64, 128>}, {pipeline_mode = #tpu.pipeline_mode<synchronous>, transform_indices = @transform_2, window_bounds = array<i64: 128, 128>}, {pipeline_mode = #tpu.pipeline_mode<synchronous>, transform_indices = @transform_3, window_bounds = array<i64: 128, 128>}, {transform_indices = @transform_4, window_bounds = array<i64: 16, 16>}]} {
    %c0 = arith.constant 0 : index
    %c0_0 = arith.constant 0 : index
    %0 = vector.load %arg2[%c0, %c0_0] : memref<64x128xbf16, #tpu.memory_space<vmem>>, vector<64x128xbf16>
    %c0_1 = arith.constant 0 : index
    %c0_2 = arith.constant 0 : index
    %1 = vector.load %arg3[%c0_1, %c0_2] : memref<128x128xbf16, #tpu.memory_space<vmem>>, vector<128x128xbf16>
    %c0_3 = arith.constant 0 : index
    %c0_4 = arith.constant 0 : index
    %2 = vector.load %arg4[%c0_3, %c0_4] : memref<128x128xbf16, #tpu.memory_space<vmem>>, vector<128x128xbf16>
    %c0_5 = arith.constant 0 : index
    %c0_6 = arith.constant 0 : index
    %3 = vector.load %arg1[%c0_5, %c0_6] : memref<16x64xbf16, #tpu.memory_space<vmem>>, vector<16x64xbf16>
    %cst = arith.constant dense<0.000000e+00> : vector<16x128xf32>
    %4 = tpu.matmul %3, %0, %cst {dimension_numbers = #tpu.dot_dimension_numbers<[1], [0], [0], [1], [0, 0, 1, 1], [], []>} : vector<16x64xbf16>, vector<64x128xbf16>, vector<16x128xf32> -> vector<16x128xf32>
    %5 = math.tanh %4 : vector<16x128xf32>
    %6 = arith.truncf %5 : vector<16x128xf32> to vector<16x128xbf16>
    %cst_7 = arith.constant dense<0.000000e+00> : vector<16x128xf32>
    %7 = tpu.matmul %6, %1, %cst_7 {dimension_numbers = #tpu.dot_dimension_numbers<[1], [0], [0], [1], [0, 0, 1, 1], [], []>} : vector<16x128xbf16>, vector<128x128xbf16>, vector<16x128xf32> -> vector<16x128xf32>
    %8 = math.tanh %7 : vector<16x128xf32>
    %9 = arith.truncf %8 : vector<16x128xf32> to vector<16x128xbf16>
    %cst_8 = arith.constant dense<0.000000e+00> : vector<16x128xf32>
    %10 = tpu.matmul %9, %1, %cst_8 {dimension_numbers = #tpu.dot_dimension_numbers<[1], [0], [0], [1], [0, 0, 1, 1], [], []>} : vector<16x128xbf16>, vector<128x128xbf16>, vector<16x128xf32> -> vector<16x128xf32>
    %11 = math.tanh %10 : vector<16x128xf32>
    %12 = arith.truncf %11 : vector<16x128xf32> to vector<16x128xbf16>
    %cst_9 = arith.constant dense<0.000000e+00> : vector<16x128xf32>
    %13 = tpu.matmul %12, %1, %cst_9 {dimension_numbers = #tpu.dot_dimension_numbers<[1], [0], [0], [1], [0, 0, 1, 1], [], []>} : vector<16x128xbf16>, vector<128x128xbf16>, vector<16x128xf32> -> vector<16x128xf32>
    %14 = math.tanh %13 : vector<16x128xf32>
    %15 = arith.truncf %14 : vector<16x128xf32> to vector<16x128xbf16>
    %cst_10 = arith.constant dense<0.000000e+00> : vector<16x128xf32>
    %16 = tpu.matmul %15, %2, %cst_10 {dimension_numbers = #tpu.dot_dimension_numbers<[1], [0], [0], [1], [0, 0, 1, 1], [], []>} : vector<16x128xbf16>, vector<128x128xbf16>, vector<16x128xf32> -> vector<16x128xf32>
    %17 = vector.extract_strided_slice %16 {offsets = [0, 0], sizes = [16, 16], strides = [1, 1]} : vector<16x128xf32> to vector<16x16xf32>
    %c0_11 = arith.constant 0 : index
    %c0_12 = arith.constant 0 : index
    %18 = vector.load %arg5[%c0_11, %c0_12] : memref<16x16xf32, #tpu.memory_space<vmem>>, vector<16x16xf32>
    tpu.vector_store %arg5[%c0_11, %c0_12], %17 {strides = array<i32>} : memref<16x16xf32, #tpu.memory_space<vmem>>, vector<16x16xf32>,
    return
  }
  func.func @transform_0(%arg0: i32) -> (i32, i32) {
    %c0_i32 = arith.constant 0 : i32
    %c0_i32_0 = arith.constant 0 : i32
    return %arg0, %c0_i32 : i32, i32
  }
  func.func @transform_1(%arg0: i32) -> (i32, i32) {
    %c0_i32 = arith.constant 0 : i32
    %c0_i32_0 = arith.constant 0 : i32
    %c0_i32_1 = arith.constant 0 : i32
    return %c0_i32, %c0_i32_0 : i32, i32
  }
  func.func @transform_2(%arg0: i32) -> (i32, i32) {
    %c0_i32 = arith.constant 0 : i32
    %c0_i32_0 = arith.constant 0 : i32
    %c0_i32_1 = arith.constant 0 : i32
    return %c0_i32, %c0_i32_0 : i32, i32
  }
  func.func @transform_3(%arg0: i32) -> (i32, i32) {
    %c0_i32 = arith.constant 0 : i32
    %c0_i32_0 = arith.constant 0 : i32
    %c0_i32_1 = arith.constant 0 : i32
    return %c0_i32, %c0_i32_0 : i32, i32
  }
  func.func @transform_4(%arg0: i32) -> (i32, i32) {
    %c0_i32 = arith.constant 0 : i32
    %c0_i32_0 = arith.constant 0 : i32
    return %arg0, %c0_i32 : i32, i32
  }
}

</mosaic_0001>

<bundles_post_ra>
// kernel: qlen_forward.1
= control target key start
LH: loop header
LB: loop body
LE: loop exit
PB: predicated region body
PF: predicated region fallthrough
CT: control target
= control target key end

     0   :  { %9 = vsyncpa [#allocation3], 0  ;;  %s864_s0 = inlined_call_operand.vmem [shape: bf16[16,64], index: 0, kind: input, shape index: {}]   ;;  %s865_s1 = inlined_call_operand.hbm [shape: bf16[64,128], index: 1, kind: input, shape index: {}]   ;;  %s866_s2 = inlined_call_operand.hbm [shape: bf16[128,128], index: 2, kind: input, shape index: {}]   ;;  %s867_s3 = inlined_call_operand.hbm [shape: bf16[128,128], index: 3, kind: input, shape index: {}]   ;;  %s868_s4 = inlined_call_operand.vmem [shape: f32[16,16], index: 4, kind: output, shape index: {}]  }
   0x1   :  { %10 = vsyncpa [#allocation5], 0  ;;  %s725_s15 = smov [#allocation4]   ;;  %s726_s17 = smov [#allocation2]  }
   0x2   :  { %s30_s16 = sshll.u32 %s725_s15, 4  ;;  %s18_s18 = sshll.u32 %s726_s17, 4  ;;  %s31_s16 = int_to_ptr.vmem [resolvable:$true] %s30_s16  ;;  %s757_s18 = int_to_ptr.vmem [resolvable:$true] %s18_s18 }
   0x3   :  { %s655_s21 = scalar_lea.hbm %s866_s2, 1024 }
   0x4   :  { %p656_p0 = scmp.ne.s32.totalorder %s866_s2, %s655_s21  ;;  %p659_p1 = scmp.lt.u32.totalorder %s655_s21, %s866_s2 }
   0x6   :  { %p661_p2 = pnand %p659_p1, %p656_p0 }
   0x8   :  { %664 = shalt.err (!%p661_p2)
}
   0x9   :  { %s665_s26 = scalar_lea.vmem %s31_s16, 1024  ;;  %p670_p4 = scmp.lt.s32.totalorder %s31_s16, %s31_s16 }
   0xa   :  { %p666_p3 = scmp.ne.s32.totalorder %s31_s16, %s665_s26  ;;  %p671_p5 = scmp.lt.s32.totalorder %s665_s26, %s665_s26 }
   0xc   :  { %p672_p6 = por %p671_p5, %p670_p4 }
   0xe   :  { %p673_p7 = pnand %p672_p6, %p666_p3 }
  0x10   :  { %676 = shalt.err (!%p673_p7)
}
  0x11   :  { %s727_s27 = smov 64   ;;  %s728_s28 = smov 4  }
  0x12   :  { %36 = dma.hbm_to_vmem [thread:$0]  %s866_s2, 1024, %s31_s16, [#allocation5], %s727_s27, %s727_s27, %s728_s28  }
  0x13   :  { %s677_s7 = scalar_lea.hbm %s865_s1, 512 }
  0x14   :  { %p678_p8 = scmp.ne.s32.totalorder %s865_s1, %s677_s7  ;;  %p681_p9 = scmp.lt.u32.totalorder %s677_s7, %s865_s1 }
  0x16   :  { %p683_p10 = pnand %p681_p9, %p678_p8 }
  0x18   :  { %686 = shalt.err (!%p683_p10)
}
  0x19   :  { %s687_s12 = scalar_lea.vmem %s757_s18, 512  ;;  %p692_p12 = scmp.lt.s32.totalorder %s757_s18, %s757_s18 }
  0x1a   :  { %p688_p11 = scmp.ne.s32.totalorder %s757_s18, %s687_s12  ;;  %p693_p13 = scmp.lt.s32.totalorder %s687_s12, %s687_s12 }
  0x1c   :  { %p694_p0 = por %p693_p13, %p692_p12 }
  0x1e   :  { %p695_p1 = pnand %p694_p0, %p688_p11 }
  0x20   :  { %698 = shalt.err (!%p695_p1)
}
  0x21   :  { %24 = dma.hbm_to_vmem [thread:$0]  %s865_s1, 512, %s757_s18, [#allocation3], %s727_s27, %s727_s27, %s728_s28  }
  0x22   :  { %s729_s14 = smov [#allocation6]   ;;  %s699_s19 = scalar_lea.hbm %s867_s3, 1024 }
  0x23   :  { %s42_s15 = sshll.u32 %s729_s14, 4  ;;  %p700_p2 = scmp.ne.s32.totalorder %s867_s3, %s699_s19  ;;  %s43_s15 = int_to_ptr.vmem [resolvable:$true] %s42_s15 }
  0x24   :  { %p703_p3 = scmp.lt.u32.totalorder %s699_s19, %s867_s3 }
  0x26   :  { %p705_p4 = pnand %p703_p3, %p700_p2 }
  0x28   :  { %708 = shalt.err (!%p705_p4)
}
  0x29   :  { %s709_s24 = scalar_lea.vmem %s43_s15, 1024  ;;  %p714_p6 = scmp.lt.s32.totalorder %s43_s15, %s43_s15 }
  0x2a   :  { %p710_p5 = scmp.ne.s32.totalorder %s43_s15, %s709_s24  ;;  %p715_p7 = scmp.lt.s32.totalorder %s709_s24, %s709_s24 }
  0x2c   :  { %p716_p8 = por %p715_p7, %p714_p6 }
  0x2e   :  { %p717_p9 = pnand %p716_p8, %p710_p5 }
  0x30   :  { %720 = shalt.err (!%p717_p9)
}
  0x31   :  { %48 = dma.hbm_to_vmem [thread:$0]  %s867_s3, 1024, %s43_s15, [#allocation5], %s727_s27, %s727_s27, %s728_s28  }
  0x32   :  { %721 = dma.done.wait [#allocation3], 512  }
  0x33   :  { %722 = vsyncadd [#allocation3], 4294966784 }
  0x34   :  { %723 = dma.done.wait [#allocation5], 2048  }
  0x35   :  { %724 = vsyncadd [#allocation5], 4294965248  ;;  %v730_v0 = vmov 0.0   ;;  %vm731_vm0 = vmmov 0   ;;  %v618_v1 = vld [vmem:[#allocation2] sm:$0xff]   ;;  %v619_v2 = vld [vmem:[#allocation2 + $0x8] sm:$0xff]  }
  0x36   :  { %519 = vmatprep.subr.bf16.mxu0 %v730_v0  ;;  %527 = vmatprep.mubr.msk.bf16.mxu0 %vm731_vm0, %v730_v0  ;;  %v623_v3 = vld [vmem:[#allocation4] sm:$0xff]   ;;  %v620_v4 = vld [vmem:[#allocation2 + $0x10] sm:$0xff]   ;;  %v624_v5 = vld [vmem:[#allocation4 + $0x8] sm:$0xff]   ;;  %vm130_vm1 = vcmask 523264   ;;  %vm447_vm2 = vcmask 130048  }
  0x37   :  { %531 = vmatprep.subr.bf16.mxu1 %v730_v0  ;;  %547 = vmatprep.mubr.msk.bf16.mxu1 %vm731_vm0, %v730_v0  ;;  %v621_v6 = vld [vmem:[#allocation2 + $0x18] sm:$0xff]   ;;  %v625_v7 = vld [vmem:[#allocation4 + $0x10] sm:$0xff]   ;;  %v622_v8 = vld [vmem:[%s864_s0] sm:$0xff]  }
  0x38   :  { %520 = vmatpush3.bf16.msra.mxu0 %v618_v1  ;;  %532 = vmatpush3.bf16.msra.mxu1 %v623_v3  ;;  %v626_v9 = vld [vmem:[#allocation4 + $0x18] sm:$0xff]   ;;  %v627_v10 = vld [vmem:[#allocation4 + $0x20] sm:$0xff]   ;;  %v628_v11 = vld [vmem:[#allocation4 + $0x28] sm:$0xff]  }
  0x39   :  { %521 = vmatprep.subr.bf16.mxu0 %v730_v0  ;;  %533 = vmatprep.subr.bf16.mxu1 %v730_v0  ;;  %v629_v12 = vld [vmem:[#allocation4 + $0x30] sm:$0xff]   ;;  %v630_v13 = vld [vmem:[#allocation4 + $0x38] sm:$0xff]   ;;  %v631_v28 = vld [vmem:[#allocation6] sm:$0xff]  }
  0x3a   :  { %v632_v29 = vld [vmem:[#allocation6 + $0x8] sm:$0xff]   ;;  %v633_v30 = vld [vmem:[#allocation6 + $0x10] sm:$0xff]   ;;  %v634_v31 = vld [vmem:[#allocation6 + $0x18] sm:$0xff]  }
  0x3b   :  { %v635_v39 = vld [vmem:[#allocation6 + $0x20] sm:$0xff]   ;;  %v636_v40 = vld [vmem:[#allocation6 + $0x28] sm:$0xff]   ;;  %v637_v41 = vld [vmem:[#allocation6 + $0x30] sm:$0xff]  }
  0x3c   :  { %522 = vmatpush3.bf16.msra.mxu0 %v619_v2  ;;  %534 = vmatpush3.bf16.msra.mxu1 %v624_v5  ;;  %v638_v42 = vld [vmem:[#allocation6 + $0x38] sm:$0xff]  }
  0x3d   :  { %523 = vmatprep.subr.bf16.mxu0 %v730_v0  ;;  %535 = vmatprep.subr.bf16.mxu1 %v730_v0 }
  0x40   :  { %524 = vmatpush3.bf16.msra.mxu0 %v620_v4  ;;  %536 = vmatpush3.bf16.msra.mxu1 %v625_v7 }
  0x41   :  { %525 = vmatprep.subr.bf16.mxu0 %v730_v0  ;;  %537 = vmatprep.subr.bf16.mxu1 %v730_v0 }
  0x44   :  { %526 = vmatpush3.bf16.msra.mxu0 %v621_v6  ;;  %538 = vmatpush3.bf16.msra.mxu1 %v626_v9 }
  0x45   :  { %551 = vmatprep.subr.bf16.mxu0 %v730_v0  ;;  %539 = vmatprep.subr.bf16.mxu1 %v730_v0 }
  0x47   :  { %528 = vmatmul.mubr.msk.bf16.vlgmr.msra.gmra.mrb[0].mxu0 %vm130_vm1, %v622_v8 }
  0x48   :  { %552 = vmatpush3.bf16.msra.mxu0 %v623_v3  ;;  %567 = vmatprep.mubr.msk.bf16.mxu0 %vm731_vm0, %v730_v0 }
  0x49   :  { %553 = vmatprep.subr.bf16.mxu0 %v730_v0  ;;  %540 = vmatpush3.bf16.msra.mxu1 %v627_v10 }
  0x4a   :  { %541 = vmatprep.subr.bf16.mxu1 %v730_v0 }
  0x4c   :  { %554 = vmatpush3.bf16.msra.mxu0 %v624_v5 }
  0x4d   :  { %555 = vmatprep.subr.bf16.mxu0 %v730_v0  ;;  %542 = vmatpush3.bf16.msra.mxu1 %v628_v11 }
  0x4e   :  { %543 = vmatprep.subr.bf16.mxu1 %v730_v0 }
  0x50   :  { %556 = vmatpush3.bf16.msra.mxu0 %v625_v7 }
  0x51   :  { %557 = vmatprep.subr.bf16.mxu0 %v730_v0  ;;  %544 = vmatpush3.bf16.msra.mxu1 %v629_v12 }
  0x52   :  { %545 = vmatprep.subr.bf16.mxu1 %v730_v0 }
  0x54   :  { %558 = vmatpush3.bf16.msra.mxu0 %v626_v9 }
  0x55   :  { %559 = vmatprep.subr.bf16.mxu0 %v730_v0  ;;  %546 = vmatpush3.bf16.msra.mxu1 %v630_v13 }
  0x56   :  { %571 = vmatprep.subr.bf16.mxu1 %v730_v0 }
  0x58   :  { %560 = vmatpush3.bf16.msra.mxu0 %v627_v10 }
  0x59   :  { %561 = vmatprep.subr.bf16.mxu0 %v730_v0 }
  0x5c   :  { %562 = vmatpush3.bf16.msra.mxu0 %v628_v11 }
  0x5d   :  { %563 = vmatprep.subr.bf16.mxu0 %v730_v0 }
  0x60   :  { %564 = vmatpush3.bf16.msra.mxu0 %v629_v12 }
  0x61   :  { %565 = vmatprep.subr.bf16.mxu0 %v730_v0 }
  0x64   :  { %566 = vmatpush3.bf16.msra.mxu0 %v630_v13 }
  0x65   :  { %591 = vmatprep.subr.bf16.mxu0 %v730_v0 }
 0x11a   :  { %v168_v14 = vpop.f32.mrb[0].mxu0 }
 0x11b   :  { %v529_v15 = vpop.f32.mrb[1].mxu0  ;;  %639 = vtanh.f32 %v168_v14 }
 0x11c   :  { %v171_v16 = vpop.f32.mrb[2].mxu0 }
 0x11d   :  { %641 = vtanh.f32 %v171_v16  ;;  %v530_v17 = vpop.f32.mrb[3].mxu0 }
 0x125   :  { %v640_v18 = vpop.eup %639 }
 0x127   :  { %v642_v19 = vpop.eup %641 }
 0x128   :  { %v177_v20 = vpack.c.bf16 %v642_v19, %v640_v18 }
 0x12a   :  { %548 = vmatmul.mubr.bf16.vlgmr.msra.gmra.mrb[0].mxu1 %v177_v20 }
 0x12b   :  { %572 = vmatpush3.bf16.msra.mxu1 %v623_v3  ;;  %587 = vmatprep.mubr.msk.bf16.mxu1 %vm731_vm0, %v730_v0 }
 0x12c   :  { %573 = vmatprep.subr.bf16.mxu1 %v730_v0 }
 0x12f   :  { %574 = vmatpush3.bf16.msra.mxu1 %v624_v5 }
 0x130   :  { %575 = vmatprep.subr.bf16.mxu1 %v730_v0 }
 0x133   :  { %576 = vmatpush3.bf16.msra.mxu1 %v625_v7 }
 0x134   :  { %577 = vmatprep.subr.bf16.mxu1 %v730_v0 }
 0x137   :  { %578 = vmatpush3.bf16.msra.mxu1 %v626_v9 }
 0x138   :  { %579 = vmatprep.subr.bf16.mxu1 %v730_v0 }
 0x13b   :  { %580 = vmatpush3.bf16.msra.mxu1 %v627_v10 }
 0x13c   :  { %581 = vmatprep.subr.bf16.mxu1 %v730_v0 }
 0x13f   :  { %582 = vmatpush3.bf16.msra.mxu1 %v628_v11 }
 0x140   :  { %583 = vmatprep.subr.bf16.mxu1 %v730_v0 }
 0x143   :  { %584 = vmatpush3.bf16.msra.mxu1 %v629_v12 }
 0x144   :  { %585 = vmatprep.subr.bf16.mxu1 %v730_v0 }
 0x147   :  { %586 = vmatpush3.bf16.msra.mxu1 %v630_v13 }
 0x1fd   :  { %v260_v21 = vpop.f32.mrb[0].mxu1 }
 0x1fe   :  { %v549_v22 = vpop.f32.mrb[1].mxu1  ;;  %643 = vtanh.f32 %v260_v21 }
 0x1ff   :  { %v263_v23 = vpop.f32.mrb[2].mxu1 }
 0x200   :  { %645 = vtanh.f32 %v263_v23  ;;  %v550_v24 = vpop.f32.mrb[3].mxu1 }
 0x208   :  { %v644_v25 = vpop.eup %643 }
 0x20a   :  { %v646_v26 = vpop.eup %645 }
 0x20b   :  { %v269_v27 = vpack.c.bf16 %v646_v26, %v644_v25 }
 0x20d   :  { %568 = vmatmul.mubr.bf16.vlgmr.msra.gmra.mrb[4].mxu0 %v269_v27 }
 0x20e   :  { %607 = vmatprep.mubr.msk.bf16.mxu0 %vm731_vm0, %v730_v0  ;;  %592 = vmatpush3.bf16.msra.mxu0 %v631_v28 }
 0x20f   :  { %593 = vmatprep.subr.bf16.mxu0 %v730_v0 }
 0x212   :  { %594 = vmatpush3.bf16.msra.mxu0 %v632_v29 }
 0x213   :  { %595 = vmatprep.subr.bf16.mxu0 %v730_v0 }
 0x216   :  { %596 = vmatpush3.bf16.msra.mxu0 %v633_v30 }
 0x217   :  { %597 = vmatprep.subr.bf16.mxu0 %v730_v0 }
 0x21a   :  { %598 = vmatpush3.bf16.msra.mxu0 %v634_v31 }
 0x21b   :  { %599 = vmatprep.subr.bf16.mxu0 %v730_v0 }
 0x21e   :  { %600 = vmatpush3.bf16.msra.mxu0 %v635_v39 }
 0x21f   :  { %601 = vmatprep.subr.bf16.mxu0 %v730_v0 }
 0x222   :  { %602 = vmatpush3.bf16.msra.mxu0 %v636_v40 }
 0x223   :  { %603 = vmatprep.subr.bf16.mxu0 %v730_v0 }
 0x226   :  { %604 = vmatpush3.bf16.msra.mxu0 %v637_v41 }
 0x227   :  { %605 = vmatprep.subr.bf16.mxu0 %v730_v0 }
 0x22a   :  { %606 = vmatpush3.bf16.msra.mxu0 %v638_v42 }
 0x2e0   :  { %v304_v32 = vpop.f32.mrb[4].mxu0 }
 0x2e1   :  { %v569_v33 = vpop.f32.mrb[5].mxu0  ;;  %647 = vtanh.f32 %v304_v32 }
 0x2e2   :  { %v307_v34 = vpop.f32.mrb[6].mxu0 }
 0x2e3   :  { %649 = vtanh.f32 %v307_v34  ;;  %v570_v35 = vpop.f32.mrb[7].mxu0 }
 0x2eb   :  { %v648_v36 = vpop.eup %647 }
 0x2ed   :  { %v650_v37 = vpop.eup %649 }
 0x2ee   :  { %v313_v38 = vpack.c.bf16 %v650_v37, %v648_v36 }
 0x2f0   :  { %588 = vmatmul.mubr.bf16.vlgmr.msra.gmra.mrb[4].mxu1 %v313_v38 }
 0x3c3   :  { %v348_v43 = vpop.f32.mrb[4].mxu1 }
 0x3c4   :  { %v589_v44 = vpop.f32.mrb[5].mxu1  ;;  %651 = vtanh.f32 %v348_v43 }
 0x3c5   :  { %v351_v45 = vpop.f32.mrb[6].mxu1 }
 0x3c6   :  { %653 = vtanh.f32 %v351_v45  ;;  %v590_v46 = vpop.f32.mrb[7].mxu1 }
 0x3ce   :  { %v652_v47 = vpop.eup %651 }
 0x3d0   :  { %v654_v48 = vpop.eup %653 }
 0x3d1   :  { %v357_v49 = vpack.c.bf16 %v654_v48, %v652_v47 }
 0x3d3   :  { %608 = vmatmul.mubr.bf16.vlgmr.msra.gmra.mrb[8].mxu0 %v357_v49 }
 0x4a6   :  { %v440_v50 = vpop.f32.mrb[8].mxu0 }
 0x4a7   :  { %448 = vst.msk [vmem:[%s868_s4] sm:$0xff] %vm447_vm2, %v440_v50  ;;  %v609_v51 = vpop.f32.mrb[9].mxu0 }
 0x4a8   :  { %v443_v52 = vpop.f32.mrb[10].mxu0 }
 0x4a9   :  { %449 = vst.msk [vmem:[%s868_s4 + $0x8] sm:$0xff] %vm447_vm2, %v443_v52  ;;  %v610_v53 = vpop.f32.mrb[11].mxu0 }
 0x4aa   :  { %454 = vsyncpa [#allocation3], 1 }
 0x4ab   :  { %455 = vsyncpa [#allocation5], 1 }

</bundles_post_ra>
